<compile_context>
chip_gen: v5e
topology: v5e:2x2
jax: 0.10.0
libtpu: 0.0.40
codegen_flags: <defaults>
</compile_context>

<pallas_src>
import jax
import jax.numpy as jnp
from jax import lax
from jax.experimental import pallas as pl
from jax.experimental.pallas import tpu as pltpu

_LANE = 128
_SUBLANE = 8


def _round_up(x, m):
    return ((x + m - 1) // m) * m


def _make_focal_kernel(ragged, rows, tile_rows, tiles_per_core):
    """Build the kernel body with static tiling metadata baked in."""

    def kernel(p_ref, t_ref, sum_ref, cnt_ref, sum_acc, cnt_acc):
        i = pl.program_id(1)

        @pl.when(i == 0)
        def _init():
            sum_acc[...] = jnp.zeros_like(sum_acc)
            cnt_acc[...] = jnp.zeros_like(cnt_acc)

        p = p_ref[...].astype(jnp.float32)
        t = t_ref[...].astype(jnp.float32)

        pos = t == 1.0                            # target.eq(1)
        pos_f = pos.astype(jnp.float32)
        neg_f = (t < 1.0).astype(jnp.float32)     # target.lt(1)

        one_minus_p = 1.0 - p
        one_minus_t = 1.0 - t

        # Single EUP log per element (branches are mutually exclusive); also
        # avoids -inf * 0 = NaN on the masked-out branch at p == 0 / p == 1.
        lv = jnp.log(jnp.where(pos, p, one_minus_p))

        omp2 = one_minus_p * one_minus_p          # (1 - p)^2   (alpha = 2)
        p2 = p * p                                # p^2         (alpha = 2)
        omt2 = one_minus_t * one_minus_t
        omt4 = omt2 * omt2                        # (1 - t)^4   (beta = 4)

        weight = jnp.where(pos, omp2, omt4 * p2 * neg_f)
        contrib = weight * lv

        if ragged:
            # Mask rows past the true extent (partial final tile, or a
            # clamped duplicate tile on the last core).  Uses the UN-clamped
            # nominal tile id so duplicated tiles mask to zero entirely.
            # jnp.where selects, so stale/NaN data in masked rows is inert.
            c = pl.program_id(0)
            tile_id = c * tiles_per_core + i
            row0 = tile_id * tile_rows
            row_ids = lax.broadcasted_iota(jnp.int32, (tile_rows, _LANE), 0)
            valid = (row0 + row_ids) < rows
            contrib = jnp.where(valid, contrib, 0.0)
            pos_f = jnp.where(valid, pos_f, 0.0)

        # Lane-partial accumulation only (sublane reduce on the XLU); the
        # cheap cross-lane reduction happens outside the kernel on a tiny
        # (num_cores, 1, 128) array.
        sum_acc[...] += jnp.sum(contrib, axis=0, keepdims=True)
        cnt_acc[...] += jnp.sum(pos_f, axis=0, keepdims=True)

        @pl.when(i == pl.num_programs(1) - 1)
        def _finalize():
            sum_ref[...] = sum_acc[...]
            cnt_ref[...] = cnt_acc[...]

    return kernel


def focal_loss(predict, target, *, tile_rows=4096, num_cores=2, input_dtype=None):
    """CenterNet focal loss forward.

    predict / target: same-shape float arrays (typically (B, C, H, W)
    post-sigmoid heatmaps).  Returns a scalar float32 loss.
    """
    assert predict.shape == target.shape
    if input_dtype is not None:
        # Only a win when inputs are already (or can cheaply be) low
        # precision; the cast itself is an extra HBM pass otherwise.
        predict = predict.astype(input_dtype)
        target = target.astype(input_dtype)

    total = predict.size
    p_flat = predict.reshape(-1)
    t_flat = target.reshape(-1)

    # Keep rows a multiple of the sublane count so every block layout is
    # legal.  Typical heatmap sizes are multiples of 8*128 and take the
    # zero-copy path; only odd sizes pay this (whole-array) pad copy.
    chunk = _SUBLANE * _LANE
    padded_total = _round_up(total, chunk)
    if padded_total != total:
        # p=0, t=0 padding contributes exactly 0 to both the loss sum and N.
        pad = padded_total - total
        p_flat = jnp.pad(p_flat, (0, pad))
        t_flat = jnp.pad(t_flat, (0, pad))
    rows = padded_total // _LANE
    p2d = p_flat.reshape(rows, _LANE)
    t2d = t_flat.reshape(rows, _LANE)

    # Tile sizing: (tile_rows, 128) per input block.  tile_rows=4096 is
    # ~2 MiB f32 (~1 MiB bf16) per input block, so 2 inputs x 2 pipeline
    # buffers stay inside the default scoped-VMEM limit on v5e/v6e/v7x.
    if rows <= tile_rows:
        tile_rows = rows                       # full-extent row block (always legal)
    else:
        tile_rows = _round_up(tile_rows, 16)   # bf16 sublane packing friendly

    num_tiles = pl.cdiv(rows, tile_rows)
    num_cores = max(1, min(num_cores, num_tiles))
    tiles_per_core = pl.cdiv(num_tiles, num_cores)
    # ragged == True  <=>  partial final tile and/or uneven core split.
    ragged = (num_cores * tiles_per_core * tile_rows) != rows

    def in_index_map(c, i):
        tile = c * tiles_per_core + i
        if ragged:
            # Keep block indices in range; duplicated tiles are masked to
            # zero inside the kernel (mask uses the un-clamped tile id).
            tile = jnp.minimum(tile, num_tiles - 1)
        return (tile, 0)

    in_spec = pl.BlockSpec((tile_rows, _LANE), in_index_map)
    out_spec = pl.BlockSpec((None, 1, _LANE), lambda c, i: (c, 0, 0))

    kernel = _make_focal_kernel(ragged, rows, tile_rows, tiles_per_core)

    out_sum, out_cnt = pl.pallas_call(
        kernel,
        out_shape=(
            jax.ShapeDtypeStruct((num_cores, 1, _LANE), jnp.float32),
            jax.ShapeDtypeStruct((num_cores, 1, _LANE), jnp.float32),
        ),
        grid_spec=pltpu.PrefetchScalarGridSpec(
            num_scalar_prefetch=0,
            grid=(num_cores, tiles_per_core),
            in_specs=[in_spec, in_spec],
            out_specs=[out_spec, out_spec],
            scratch_shapes=[
                pltpu.VMEM((1, _LANE), jnp.float32),
                pltpu.VMEM((1, _LANE), jnp.float32),
            ],
        ),
        compiler_params=pltpu.CompilerParams(
            dimension_semantics=("parallel", "arbitrary")),
    )(p2d, t2d)

    total_sum = jnp.sum(out_sum)
    n = jnp.sum(out_cnt)
    n = jnp.where(n == 0.0, 1.0, n)               # if N == 0: N = 1
    return -total_sum / n


def focal_loss_ref(predict, target):
    """Pure-JAX reference mirroring the PyTorch forward exactly."""
    alpha, beta = 2, 4
    p = jnp.transpose(predict, (0, 2, 3, 1)).astype(jnp.float32)
    t = jnp.transpose(target, (0, 2, 3, 1)).astype(jnp.float32)
    pos_mask = (t == 1.0).astype(jnp.float32)
    neg_mask = (t < 1.0).astype(jnp.float32)
    pos_loss = (1.0 - p) ** alpha * jnp.log(p) * pos_mask
    neg_loss = (1.0 - t) ** beta * p ** alpha * jnp.log(1.0 - p) * neg_mask
    n = jnp.sum(pos_mask)
    n = jnp.where(n == 0.0, 1.0, n)
    return -1.0 / n * jnp.sum(pos_loss + neg_loss)


def _make_inputs(kp, kt, shape):
    predict = jax.nn.sigmoid(jax.random.normal(kp, shape, jnp.float32))
    u = jax.random.uniform(kt, shape, jnp.float32)
    target = jnp.where(u > 0.9, 1.0, u * 0.8)
    return predict, target


if __name__ == "__main__":
    key = jax.random.PRNGKey(0)
    keys = jax.random.split(key, 8)

    # --- A: primary small test (module-consistent shapes, single tile) ---
    pA, tA = _make_inputs(keys[0], keys[1], (2, 4, 16, 16))
    refA = focal_loss_ref(pA, tA)
    outA = focal_loss(pA, tA)
    jax.block_until_ready(outA)
    assert jnp.allclose(outA, refA, rtol=1e-4, atol=1e-4), (outA, refA)

    # --- B: multi-tile accumulation + even 2-core split ---
    pB, tB = _make_inputs(keys[2], keys[3], (2, 4, 32, 32))
    refB = focal_loss_ref(pB, tB)
    outB = focal_loss(pB, tB, tile_rows=16, num_cores=2)      # grid (2, 2)
    jax.block_until_ready(outB)
    assert jnp.allclose(outB, refB, rtol=1e-4, atol=1e-4), (outB, refB)

    # --- C: ragged split (uneven tiles/core -> clamped duplicate, masked) ---
    pC, tC = _make_inputs(keys[4], keys[5], (2, 4, 24, 32))    # 48 rows, 3 tiles
    refC = focal_loss_ref(pC, tC)
    outC = focal_loss(pC, tC, tile_rows=16, num_cores=2)       # grid (2, 2), ragged
    jax.block_until_ready(outC)
    assert jnp.allclose(outC, refC, rtol=1e-4, atol=1e-4), (outC, refC)

    # --- D: partial final row tile (rows % tile_rows != 0, in-kernel mask) ---
    pD, tD = _make_inputs(keys[6], keys[7], (2, 4, 16, 24))    # 24 rows
    refD = focal_loss_ref(pD, tD)
    outD = focal_loss(pD, tD, tile_rows=16, num_cores=2)       # grid (2, 1), ragged
    jax.block_until_ready(outD)
    assert jnp.allclose(outD, refD, rtol=1e-4, atol=1e-4), (outD, refD)

    # --- E: non-aligned element count -> minimal pad fallback ---
    kE1, kE2 = jax.random.split(keys[0])
    pE, tE = _make_inputs(kE1, kE2, (2, 3, 10, 10))            # 600 elems
    refE = focal_loss_ref(pE, tE)
    outE = focal_loss(pE, tE)
    jax.block_until_ready(outE)
    assert jnp.allclose(outE, refE, rtol=1e-4, atol=1e-4), (outE, refE)

    # --- F: bf16 streaming path (math stays f32) ---
    out_bf16 = focal_loss(pA, tA, input_dtype=jnp.bfloat16)
    jax.block_until_ready(out_bf16)
    ref_bf16 = focal_loss_ref(
        pA.astype(jnp.bfloat16).astype(jnp.float32),
        tA.astype(jnp.bfloat16).astype(jnp.float32))
    assert jnp.allclose(out_bf16, ref_bf16, rtol=1e-3, atol=1e-3), (out_bf16, ref_bf16)

    print("KERNEL_OK")
</pallas_src>

<mosaic_0001>
module attributes {stable_mosaic.version = 11 : i64} {
  func.func @kernel(%arg0: i32, %arg1: i32, %arg2: memref<16x128xf32, #tpu.memory_space<vmem>>, %arg3: memref<16x128xf32, #tpu.memory_space<vmem>>, %arg4: memref<1x1x128xf32, #tpu.memory_space<vmem>>, %arg5: memref<1x1x128xf32, #tpu.memory_space<vmem>>, %arg6: memref<1x128xf32, #tpu.memory_space<vmem>>, %arg7: memref<1x128xf32, #tpu.memory_space<vmem>>) attributes {dimension_semantics = [#tpu.dimension_semantics<parallel>, #tpu.dimension_semantics<arbitrary>], iteration_bounds = array<i64: 1, 1>, scalar_prefetch = 0 : i64, scratch_operands = 2 : i64, tpu.core_type = #tpu.core_type<tc>, window_params = [{transform_indices = @transform_0, window_bounds = array<i64: 16, 128>}, {transform_indices = @transform_1, window_bounds = array<i64: 16, 128>}, {transform_indices = @transform_2, window_bounds = array<i64: 1, 1, 128>}, {transform_indices = @transform_3, window_bounds = array<i64: 1, 1, 128>}]} {
    %c0_i32 = arith.constant 0 : i32
    %0 = arith.cmpi eq, %arg1, %c0_i32 : i32
    %1 = arith.extui %0 : i1 to i32
    %c0_i32_0 = arith.constant 0 : i32
    %2 = arith.cmpi ne, %1, %c0_i32_0 : i32
    scf.if %2 {
      %cst_19 = arith.constant 0.000000e+00 : f32
      %40 = vector.broadcast %cst_19 : f32 to vector<1x128xf32>
      %c0_20 = arith.constant 0 : index
      %c0_21 = arith.constant 0 : index
      %41 = vector.load %arg6[%c0_20, %c0_21] : memref<1x128xf32, #tpu.memory_space<vmem>>, vector<1x128xf32>
      tpu.vector_store %arg6[%c0_20, %c0_21], %40 {strides = array<i32>} : memref<1x128xf32, #tpu.memory_space<vmem>>, vector<1x128xf32>,
      %cst_22 = arith.constant 0.000000e+00 : f32
      %42 = vector.broadcast %cst_22 : f32 to vector<1x128xf32>
      %c0_23 = arith.constant 0 : index
      %c0_24 = arith.constant 0 : index
      %43 = vector.load %arg7[%c0_23, %c0_24] : memref<1x128xf32, #tpu.memory_space<vmem>>, vector<1x128xf32>
      tpu.vector_store %arg7[%c0_23, %c0_24], %42 {strides = array<i32>} : memref<1x128xf32, #tpu.memory_space<vmem>>, vector<1x128xf32>,
    } else {
    }
    %c0 = arith.constant 0 : index
    %c0_1 = arith.constant 0 : index
    %3 = vector.load %arg2[%c0, %c0_1] : memref<16x128xf32, #tpu.memory_space<vmem>>, vector<16x128xf32>
    %c0_2 = arith.constant 0 : index
    %c0_3 = arith.constant 0 : index
    %4 = vector.load %arg3[%c0_2, %c0_3] : memref<16x128xf32, #tpu.memory_space<vmem>>, vector<16x128xf32>
    %cst = arith.constant 1.000000e+00 : f32
    %5 = vector.broadcast %cst : f32 to vector<16x128xf32>
    %6 = arith.cmpf oeq, %4, %5 : vector<16x128xf32>
    %7 = arith.extui %6 : vector<16x128xi1> to vector<16x128xi32>
    %8 = arith.sitofp %7 : vector<16x128xi32> to vector<16x128xf32>
    %cst_4 = arith.constant 1.000000e+00 : f32
    %9 = vector.broadcast %cst_4 : f32 to vector<16x128xf32>
    %10 = arith.cmpf olt, %4, %9 : vector<16x128xf32>
    %11 = arith.extui %10 : vector<16x128xi1> to vector<16x128xi32>
    %12 = arith.sitofp %11 : vector<16x128xi32> to vector<16x128xf32>
    %cst_5 = arith.constant 1.000000e+00 : f32
    %13 = vector.broadcast %cst_5 : f32 to vector<16x128xf32>
    %14 = arith.subf %13, %3 : vector<16x128xf32>
    %cst_6 = arith.constant 1.000000e+00 : f32
    %15 = vector.broadcast %cst_6 : f32 to vector<16x128xf32>
    %16 = arith.subf %15, %4 : vector<16x128xf32>
    %17 = arith.select %6, %3, %14 : vector<16x128xi1>, vector<16x128xf32>
    %18 = math.log %17 : vector<16x128xf32>
    %19 = arith.mulf %14, %14 : vector<16x128xf32>
    %20 = arith.mulf %3, %3 : vector<16x128xf32>
    %21 = arith.mulf %16, %16 : vector<16x128xf32>
    %22 = arith.mulf %21, %21 : vector<16x128xf32>
    %23 = arith.mulf %22, %20 : vector<16x128xf32>
    %24 = arith.mulf %23, %12 : vector<16x128xf32>
    %25 = arith.select %6, %19, %24 : vector<16x128xi1>, vector<16x128xf32>
    %26 = arith.mulf %25, %18 : vector<16x128xf32>
    %c0_7 = arith.constant 0 : index
    %c0_8 = arith.constant 0 : index
    %27 = vector.load %arg6[%c0_7, %c0_8] : memref<1x128xf32, #tpu.memory_space<vmem>>, vector<1x128xf32>
    %cst_9 = arith.constant dense<0.000000e+00> : vector<128xf32>
    %28 = vector.multi_reduction <add>, %26, %cst_9 [0] : vector<16x128xf32> to vector<128xf32>
    %29 = vector.shape_cast %28 : vector<128xf32> to vector<1x128xf32>
    %30 = arith.addf %27, %29 : vector<1x128xf32>
    %c0_10 = arith.constant 0 : index
    %c0_11 = arith.constant 0 : index
    %31 = vector.load %arg6[%c0_10, %c0_11] : memref<1x128xf32, #tpu.memory_space<vmem>>, vector<1x128xf32>
    tpu.vector_store %arg6[%c0_10, %c0_11], %30 {strides = array<i32>} : memref<1x128xf32, #tpu.memory_space<vmem>>, vector<1x128xf32>,
    %c0_12 = arith.constant 0 : index
    %c0_13 = arith.constant 0 : index
    %32 = vector.load %arg7[%c0_12, %c0_13] : memref<1x128xf32, #tpu.memory_space<vmem>>, vector<1x128xf32>
    %cst_14 = arith.constant dense<0.000000e+00> : vector<128xf32>
    %33 = vector.multi_reduction <add>, %8, %cst_14 [0] : vector<16x128xf32> to vector<128xf32>
    %34 = vector.shape_cast %33 : vector<128xf32> to vector<1x128xf32>
    %35 = arith.addf %32, %34 : vector<1x128xf32>
    %c0_15 = arith.constant 0 : index
    %c0_16 = arith.constant 0 : index
    %36 = vector.load %arg7[%c0_15, %c0_16] : memref<1x128xf32, #tpu.memory_space<vmem>>, vector<1x128xf32>
    tpu.vector_store %arg7[%c0_15, %c0_16], %35 {strides = array<i32>} : memref<1x128xf32, #tpu.memory_space<vmem>>, vector<1x128xf32>,
    %c0_i32_17 = arith.constant 0 : i32
    %37 = arith.cmpi eq, %arg1, %c0_i32_17 : i32
    %38 = arith.extui %37 : i1 to i32
    %c0_i32_18 = arith.constant 0 : i32
    %39 = arith.cmpi ne, %38, %c0_i32_18 : i32
    scf.if %39 {
      %c0_19 = arith.constant 0 : index
      %c0_20 = arith.constant 0 : index
      %40 = vector.load %arg6[%c0_19, %c0_20] : memref<1x128xf32, #tpu.memory_space<vmem>>, vector<1x128xf32>
      %c0_21 = arith.constant 0 : index
      %c0_22 = arith.constant 0 : index
      %c0_23 = arith.constant 0 : index
      %41 = vector.load %arg4[%c0_21, %c0_22, %c0_23] : memref<1x1x128xf32, #tpu.memory_space<vmem>>, vector<1x1x128xf32>
      %42 = vector.shape_cast %41 : vector<1x1x128xf32> to vector<1x128xf32>
      %43 = vector.shape_cast %40 : vector<1x128xf32> to vector<1x1x128xf32>
      tpu.vector_store %arg4[%c0_21, %c0_22, %c0_23], %43 {strides = array<i32>} : memref<1x1x128xf32, #tpu.memory_space<vmem>>, vector<1x1x128xf32>,
      %c0_24 = arith.constant 0 : index
      %c0_25 = arith.constant 0 : index
      %44 = vector.load %arg7[%c0_24, %c0_25] : memref<1x128xf32, #tpu.memory_space<vmem>>, vector<1x128xf32>
      %c0_26 = arith.constant 0 : index
      %c0_27 = arith.constant 0 : index
      %c0_28 = arith.constant 0 : index
      %45 = vector.load %arg5[%c0_26, %c0_27, %c0_28] : memref<1x1x128xf32, #tpu.memory_space<vmem>>, vector<1x1x128xf32>
      %46 = vector.shape_cast %45 : vector<1x1x128xf32> to vector<1x128xf32>
      %47 = vector.shape_cast %44 : vector<1x128xf32> to vector<1x1x128xf32>
      tpu.vector_store %arg5[%c0_26, %c0_27, %c0_28], %47 {strides = array<i32>} : memref<1x1x128xf32, #tpu.memory_space<vmem>>, vector<1x1x128xf32>,
    } else {
    }
    return
  }
  func.func @transform_0(%arg0: i32, %arg1: i32) -> (i32, i32) {
    %c1_i32 = arith.constant 1 : i32
    %0 = arith.muli %arg0, %c1_i32 : i32
    %1 = arith.addi %0, %arg1 : i32
    %c0_i32 = arith.constant 0 : i32
    %c0_i32_0 = arith.constant 0 : i32
    return %1, %c0_i32 : i32, i32
  }
  func.func @transform_1(%arg0: i32, %arg1: i32) -> (i32, i32) {
    %c1_i32 = arith.constant 1 : i32
    %0 = arith.muli %arg0, %c1_i32 : i32
    %1 = arith.addi %0, %arg1 : i32
    %c0_i32 = arith.constant 0 : i32
    %c0_i32_0 = arith.constant 0 : i32
    return %1, %c0_i32 : i32, i32
  }
  func.func @transform_2(%arg0: i32, %arg1: i32) -> (i32, i32, i32) {
    %c0_i32 = arith.constant 0 : i32
    %c0_i32_0 = arith.constant 0 : i32
    %c0_i32_1 = arith.constant 0 : i32
    return %arg0, %c0_i32, %c0_i32_0 : i32, i32, i32
  }
  func.func @transform_3(%arg0: i32, %arg1: i32) -> (i32, i32, i32) {
    %c0_i32 = arith.constant 0 : i32
    %c0_i32_0 = arith.constant 0 : i32
    %c0_i32_1 = arith.constant 0 : i32
    return %arg0, %c0_i32, %c0_i32_0 : i32, i32, i32
  }
}

</mosaic_0001>

<bundles_post_ra>
// kernel: tpu_custom_call.1
= control target key start
LH: loop header
LB: loop body
LE: loop exit
PB: predicated region body
PF: predicated region fallthrough
CT: control target
= control target key end

     0   :  { %9 = vsyncpa [#allocation5], 0  ;;  %s333_s0 = inlined_call_operand.hbm [shape: f32[16,128], index: 0, kind: input, shape index: {}]   ;;  %s334_s1 = inlined_call_operand.hbm [shape: f32[16,128], index: 1, kind: input, shape index: {}]   ;;  %s335_s2 = inlined_call_operand.hbm [shape: f32[1,1,128], index: 2, kind: output, shape index: {0}]   ;;  %s336_s3 = inlined_call_operand.hbm [shape: f32[1,1,128], index: 3, kind: output, shape index: {1}]  }
   0x1   :  { %10 = vsyncpa [#allocation8], 0 }
   0x2   :  { %11 = vsyncpa [#allocation6], 0 }
   0x3   :  { %12 = vsyncpa [#allocation11], 0  ;;  %s21_s14 = sshll.u32 %s333_s0, 4  ;;  %s287_s15 = smov [#allocation4]   ;;  %s22_s14 = int_to_ptr.hbm [resolvable:$true] %s21_s14 }
   0x4   :  { %s23_s16 = sshll.u32 %s287_s15, 4  ;;  %s38_s19 = sshll.u32 %s334_s1, 4  ;;  %s24_s16 = int_to_ptr.vmem [resolvable:$true] %s23_s16  ;;  %s39_s19 = int_to_ptr.hbm [resolvable:$true] %s38_s19 }
   0x5   :  { %s288_s20 = smov 128   ;;  %s289_s21 = smov 8  }
   0x6   :  { %29 = dma.hbm_to_vmem [thread:$0]  %s22_s14, 256, %s24_s16, [#allocation5], %s288_s20, %s288_s20, %s289_s21  }
   0x7   :  { %s290_s22 = smov [#allocation7]  }
   0x8   :  { %s40_s23 = sshll.u32 %s290_s22, 4  ;;  %s41_s23 = int_to_ptr.vmem [resolvable:$true] %s40_s23 }
   0x9   :  { %46 = dma.hbm_to_vmem [thread:$0]  %s39_s19, 256, %s41_s23, [#allocation8], %s288_s20, %s288_s20, %s289_s21  }
   0xa   :  { %279 = dma.done.wait [#allocation5], 256  }
   0xb   :  { %280 = vsyncadd [#allocation5], 4294967040 }
   0xc   :  { %281 = dma.done.wait [#allocation8], 256  }
   0xd   :  { %282 = vsyncadd [#allocation8], 4294967040  ;;  %v291_v0 = vmov 0.0   ;;  %v65_v1 = vld [vmem:[#allocation4] sm:$0xff]  ;;  %v67_v2 = vld [vmem:[#allocation7] sm:$0xff]  ;;  %s292_s0 = smov [#allocation10]  }
   0xe   :  { %63 = vst [vmem:[#allocation2] sm:$0x1] %v291_v0  ;;  %v66_v3 = vld [vmem:[#allocation4 + $0x8] sm:$0xff]  ;;  %v68_v4 = vld [vmem:[#allocation7 + $0x8] sm:$0xff]  ;;  %vm75_vm0 = vcmp.lt.f32.partialorder %v67_v2, 1.0  ;;  %v83_v5 = vsub.f32 1.0, %v67_v2  ;;  %v93_v7 = vmul.f32 %v65_v1, %v65_v1 }
   0xf   :  { %64 = vst [vmem:[#allocation3] sm:$0x1] %v291_v0  ;;  %v84_v6 = vsub.f32 1.0, %v68_v4  ;;  %v94_v8 = vmul.f32 %v66_v3, %v66_v3  ;;  %vm69_vm1 = vcmp.eq.f32.partialorder %v67_v2, 1.0  ;;  %vm76_vm2 = vcmp.lt.f32.partialorder %v68_v4, 1.0  ;;  %s150_s1 = sshll.u32 %s292_s0, 4  ;;  %s151_s1 = int_to_ptr.vmem [resolvable:$true] %s150_s1 }
  0x10   :  { %v95_v9 = vmul.f32 %v83_v5, %v83_v5  ;;  %vm70_vm3 = vcmp.eq.f32.partialorder %v68_v4, 1.0  ;;  %v81_v10 = vsub.f32 1.0, %v65_v1  ;;  %v82_v12 = vsub.f32 1.0, %v66_v3  ;;  %s152_s26 = sshll.u32 %s336_s3, 4  ;;  %s293_s27 = smov [#allocation9]   ;;  %s153_s26 = int_to_ptr.hbm [resolvable:$true] %s152_s26 }
  0x11   :  { %v96_v11 = vmul.f32 %v84_v6, %v84_v6  ;;  %v168_v13 = vsel %vm69_vm1, 1.0, %v291_v0  ;;  %v169_v14 = vsel %vm70_vm3, 1.0, %v291_v0  ;;  %v170_v18 = vsel %vm75_vm0, 1.0, %v291_v0  ;;  %s139_s28 = sshll.u32 %s293_s27, 4  ;;  %s141_s4 = sshll.u32 %s335_s2, 4  ;;  %s140_s28 = int_to_ptr.vmem [resolvable:$true] %s139_s28  ;;  %s142_s4 = int_to_ptr.hbm [resolvable:$true] %s141_s4 }
  0x12   :  { %v97_v15 = vmul.f32 %v95_v9, %v95_v9  ;;  %v85_v16 = vsel %vm69_vm1, %v65_v1, %v81_v10  ;;  %v118_v17 = vadd.f32 %v169_v14, %v168_v13  ;;  %v86_v20 = vsel %vm70_vm3, %v66_v3, %v82_v12 }
  0x13   :  { %v98_v19 = vmul.f32 %v96_v11, %v96_v11  ;;  %179 = vlog2.f32 %v85_v16  ;;  %v171_v21 = vsel %vm76_vm2, 1.0, %v291_v0  ;;  %v91_v25 = vmul.f32 %v81_v10, %v81_v10 }
  0x14   :  { %v99_v22 = vmul.f32 %v97_v15, %v93_v7  ;;  %181 = vlog2.f32 %v86_v20  ;;  %v119_v23 = vrot.slane %v118_v17, 4  ;;  %v92_v27 = vmul.f32 %v82_v12, %v82_v12 }
  0x15   :  { %v100_v24 = vmul.f32 %v98_v19, %v94_v8  ;;  %v107_v51 = vld [vmem:[#allocation2] sm:$0x1] }
  0x16   :  { %v101_v26 = vmul.f32 %v170_v18, %v99_v22  ;;  %v120_v28 = vadd.f32 %v119_v23, %v118_v17  ;;  %v117_v41 = vld [vmem:[#allocation3] sm:$0x1] }
  0x17   :  { %v102_v29 = vmul.f32 %v171_v21, %v100_v24 }
  0x18   :  { %v121_v30 = vrot.slane %v120_v28, 2  ;;  %v103_v32 = vsel %vm69_vm1, %v91_v25, %v101_v26 }
  0x19   :  { %v180_v31 = vpop.eup %179  ;;  %v104_v35 = vsel %vm70_vm3, %v92_v27, %v102_v29 }
  0x1a   :  { %v182_v33 = vpop.eup %181  ;;  %v88_v34 = vmul.f32 0.6931472, %v180_v31  ;;  %v122_v36 = vadd.f32 %v121_v30, %v120_v28 }
  0x1b   :  { %v90_v37 = vmul.f32 0.6931472, %v182_v33 }
  0x1c   :  { %v105_v38 = vmul.f32 %v103_v32, %v88_v34  ;;  %v123_v39 = vrot.slane %v122_v36, 1 }
  0x1d   :  { %v106_v40 = vmul.f32 %v104_v35, %v90_v37 }
  0x1e   :  { %v124_v42 = vadd.f32 %v123_v39, %v122_v36 }
  0x1f   :  { %v108_v43 = vadd.f32 %v106_v40, %v105_v38 }
  0x20   :  { %v125_v44 = vadd.f32 %v124_v42, %v117_v41 }
  0x21   :  { %v109_v45 = vrot.slane %v108_v43, 4 }
  0x22   :  { %126 = vst [vmem:[#allocation3] sm:$0x1] %v125_v44 }
  0x23   :  { %v110_v46 = vadd.f32 %v109_v45, %v108_v43 }
  0x25   :  { %v111_v47 = vrot.slane %v110_v46, 2 }
  0x27   :  { %v112_v48 = vadd.f32 %v111_v47, %v110_v46 }
  0x29   :  { %v113_v49 = vrot.slane %v112_v48, 1  ;;  %v132_v50 = vld [vmem:[#allocation3] sm:$0x1] }
  0x2a   :  { %133 = vst [vmem:[#allocation10] sm:$0x1] %v132_v50 }
  0x2b   :  { %v114_v52 = vadd.f32 %v113_v49, %v112_v48  ;;  %155 = dma.vmem_to_hbm [thread:$0]  %s151_s1, 16, %s153_s26, [#allocation11]  }
  0x2d   :  { %v115_v53 = vadd.f32 %v114_v52, %v107_v51 }
  0x2f   :  { %116 = vst [vmem:[#allocation2] sm:$0x1] %v115_v53 }
  0x36   :  { %v130_v54 = vld [vmem:[#allocation2] sm:$0x1] }
  0x37   :  { %131 = vst [vmem:[#allocation9] sm:$0x1] %v130_v54 }
  0x38   :  { %144 = dma.vmem_to_hbm [thread:$0]  %s140_s28, 16, %s142_s4, [#allocation6]  }
  0x39   :  { %283 = dma.done.wait [#allocation6], 16  }
  0x3a   :  { %284 = vsyncadd [#allocation6], 4294967280 }
  0x3b   :  { %285 = dma.done.wait [#allocation11], 16  }
  0x3c   :  { %286 = vsyncadd [#allocation11], 4294967280 }
  0x3d   :  { %164 = vsyncpa [#allocation5], 1 }
  0x3e   :  { %165 = vsyncpa [#allocation8], 1 }
  0x3f   :  { %166 = vsyncpa [#allocation6], 1 }
  0x40   :  { %167 = vsyncpa [#allocation11], 1 }

</bundles_post_ra>
